<compile_context>
chip_gen: v6e
topology: v6e:2x2x1
jax: 0.10.0
libtpu: 0.0.40
codegen_flags: <defaults>
</compile_context>

<pallas_src>
import functools

import jax
import jax.numpy as jnp
from jax.experimental import pallas as pl
from jax.experimental.pallas import tpu as pltpu

_LANE = 128    # vreg lane width
_SUBLANE = 8   # f32 sublane height


def _round_up(n, m):
    return ((n + m - 1) // m) * m


def _mlp_softmax_kernel(x_ref, w1_ref, b_ref, w2_ref, w3_ref, o_ref):
    """relu(fc1) -> relu(fc2) -> relu(fc3) -> softmax(fc3), all in VMEM.

    Matmuls run on the MXU in the weights' dtype (bf16 or f32) with f32
    accumulation; bias/relu/softmax math is f32. The padded lanes of b3 carry
    -1e30 (set in the wrapper), so padded logits vanish from the softmax
    denominator without any in-kernel masking.
    """
    cdt = w1_ref.dtype
    x = x_ref[...].astype(cdt)          # f32 -> compute dtype inside the kernel

    b1 = b_ref[0:1, :]
    b2 = b_ref[1:2, :]
    b3 = b_ref[2:3, :]

    h = jnp.dot(x, w1_ref[...], preferred_element_type=jnp.float32) + b1
    h = jnp.maximum(h, 0.0)                                   # relu(fc1(x))

    h = jnp.dot(h.astype(cdt), w2_ref[...],
                preferred_element_type=jnp.float32) + b2
    h = jnp.maximum(h, 0.0)                                   # relu(fc2(x))

    h = jnp.dot(h.astype(cdt), w3_ref[...],
                preferred_element_type=jnp.float32) + b3
    h = jnp.maximum(h, 0.0)                                   # relu(fc3(x))

    # fc3 applied AGAIN on the relu'd activations (as in the PyTorch code).
    logits = jnp.dot(h.astype(cdt), w3_ref[...],
                     preferred_element_type=jnp.float32) + b3

    m = jnp.max(logits, axis=-1, keepdims=True)
    e = jnp.exp(logits - m)                                   # padded lanes -> 0
    denom = jnp.sum(e, axis=-1, keepdims=True)
    o_ref[...] = (e * pl.reciprocal(denom, approx=True)).astype(o_ref.dtype)


@functools.partial(
    jax.jit,
    static_argnames=("block_b", "compute_dtype", "out_dtype", "force_pallas"))
def graph_keyword_tree_node_forward(x, params, block_b=2048,
                                    compute_dtype=jnp.bfloat16,
                                    out_dtype=None, force_pallas=False):
    """x: [B, input_size] float32.  params: dict of transposed ([in, out]) weights.

    Returns softmax(fc3(relu(fc3(relu(fc2(relu(fc1(x)))))))) as [B, hidden]."""
    B, in_size = x.shape
    hidden = params["w1"].shape[1]
    cdt = jnp.dtype(compute_dtype)
    odt = jnp.dtype(compute_dtype if out_dtype is None else out_dtype)

    # Tiny problems: plain XLA fusion beats the pallas_call launch overhead.
    if not force_pallas and B * hidden < 512 * 128:
        return reference_forward(x, params).astype(odt)

    # Lane-dense padding for the hidden/output features only; x's K dim stays
    # unpadded (full-extent BlockSpec) and x stays f32 (cast in-kernel).
    h_p = _round_up(hidden, _LANE)

    # Batch tile: multiple of 8 sublanes, large by default, but capped so the
    # grid has >= 2 steps when the batch allows it (both TCs on v7x).
    bb = _round_up(min(block_b, B), _SUBLANE)
    if B > 2 * _SUBLANE:
        bb = min(bb, _round_up(pl.cdiv(B, 2), _SUBLANE))
    b_p = _round_up(B, bb)

    # Rows-only pad of x (no dtype cast, no feature pad); a no-op when B is
    # already tile-aligned.
    xp = x if b_p == B else jnp.pad(x, ((0, b_p - B), (0, 0)))

    def padw(w, rows, cols):
        r, c = w.shape
        return jnp.pad(w, ((0, rows - r), (0, cols - c))).astype(cdt)

    w1 = padw(params["w1"], in_size, h_p)
    w2 = padw(params["w2"], h_p, h_p)
    w3 = padw(params["w3"], h_p, h_p)

    # Pack b1/b2/b3 into one (3, h_p) f32 block. Padded lanes of b3 get a
    # large finite negative so exp(logit)=0 there (w3's padded columns are
    # zero, so layer-3 relu still produces 0 on those lanes).
    def padb(b, fill):
        b = b.reshape(1, -1).astype(jnp.float32)
        return jnp.pad(b, ((0, 0), (0, h_p - b.shape[1])), constant_values=fill)

    b3_fill = 0.0 if h_p == hidden else -1e30
    biases = jnp.concatenate([padb(params["b1"], 0.0),
                              padb(params["b2"], 0.0),
                              padb(params["b3"], b3_fill)], axis=0)

    grid = (b_p // bb,)
    row_map = lambda i: (i, 0)
    const_map = lambda i: (0, 0)   # constant block -> weights DMA'd once, resident

    out = pl.pallas_call(
        _mlp_softmax_kernel,
        out_shape=jax.ShapeDtypeStruct((b_p, h_p), odt),
        grid_spec=pltpu.PrefetchScalarGridSpec(
            num_scalar_prefetch=0,
            grid=grid,
            in_specs=[
                pl.BlockSpec((bb, in_size), row_map),    # x tile (f32, unpadded K)
                pl.BlockSpec((in_size, h_p), const_map), # W1
                pl.BlockSpec((3, h_p), const_map),       # b1/b2/b3 packed
                pl.BlockSpec((h_p, h_p), const_map),     # W2
                pl.BlockSpec((h_p, h_p), const_map),     # W3
            ],
            out_specs=pl.BlockSpec((bb, h_p), row_map),
        ),
        compiler_params=pltpu.CompilerParams(
            dimension_semantics=("parallel",)),
    )(xp, w1, biases, w2, w3)

    # Crop only what was actually padded (row slice / feature slice elided
    # when already aligned).
    if b_p != B:
        out = out[:B]
    if h_p != hidden:
        out = out[:, :hidden]
    return out


def init_params(key, input_size, hidden_size, output_size):
    """Deterministic PyTorch-style init: U(-1/sqrt(fan_in), 1/sqrt(fan_in)).

    Weights are stored as [in, out] (transposed relative to nn.Linear)."""
    def linear(k, fan_in, fan_out):
        kw, kb = jax.random.split(k)
        bound = 1.0 / jnp.sqrt(float(fan_in))
        w = jax.random.uniform(kw, (fan_in, fan_out), jnp.float32, -bound, bound)
        b = jax.random.uniform(kb, (1, fan_out), jnp.float32, -bound, bound)
        return w, b

    k1, k2, k3, k4 = jax.random.split(key, 4)
    w1, b1 = linear(k1, input_size, hidden_size)
    w2, b2 = linear(k2, hidden_size, hidden_size)
    w3, b3 = linear(k3, hidden_size, hidden_size)
    w4, b4 = linear(k4, hidden_size, output_size)  # fc4: initialized, unused in forward
    return {"w1": w1, "b1": b1, "w2": w2, "b2": b2,
            "w3": w3, "b3": b3, "w4": w4, "b4": b4}


def reference_forward(x, p):
    """Pure-JAX f32 reference matching the PyTorch forward semantics."""
    h = jax.nn.relu(x @ p["w1"] + p["b1"])
    h = jax.nn.relu(h @ p["w2"] + p["b2"])
    h = jax.nn.relu(h @ p["w3"] + p["b3"])
    logits = h @ p["w3"] + p["b3"]
    return jax.nn.softmax(logits, axis=-1)


if __name__ == "__main__":
    # Small shapes consistent with the module; batch=10 deliberately NOT a
    # multiple of the batch tile to exercise the rows-only pad / crop path.
    batch, input_size, hidden_size, output_size = 10, 32, 32, 32

    key = jax.random.PRNGKey(0)
    kx, kp = jax.random.split(key)
    x = jax.random.normal(kx, (batch, input_size), jnp.float32)
    params = init_params(kp, input_size, hidden_size, output_size)

    ref = reference_forward(x, params)

    # f32 MXU path (tight check; only the approx EUP reciprocal differs).
    out_f32 = jax.block_until_ready(
        graph_keyword_tree_node_forward(x, params, compute_dtype=jnp.float32,
                                        force_pallas=True))
    assert out_f32.shape == (batch, hidden_size)
    assert jnp.allclose(out_f32, ref, atol=3e-3, rtol=3e-3), "f32 mismatch vs reference"

    # bf16 matmul-input / f32-accumulate path with bf16 output
    # (v6e/v7x recommendation; halves the output HBM stream).
    out_bf16 = jax.block_until_ready(
        graph_keyword_tree_node_forward(x, params, compute_dtype=jnp.bfloat16,
                                        force_pallas=True))
    assert out_bf16.shape == (batch, hidden_size)
    assert jnp.allclose(out_bf16.astype(jnp.float32), ref,
                        atol=2e-2, rtol=2e-2), "bf16 mismatch vs reference"

    # Larger (still small) batch to exercise the >=2-step grid path and the
    # tail-row boundary handling.
    x2 = jax.random.normal(jax.random.PRNGKey(1), (200, input_size), jnp.float32)
    ref2 = reference_forward(x2, params)
    out2 = jax.block_until_ready(
        graph_keyword_tree_node_forward(x2, params, compute_dtype=jnp.bfloat16,
                                        force_pallas=True))
    assert out2.shape == (200, hidden_size)
    assert jnp.allclose(out2.astype(jnp.float32), ref2,
                        atol=2e-2, rtol=2e-2), "bf16 batch-200 mismatch vs reference"

    print("KERNEL_OK")
</pallas_src>

<mosaic_0001>
module attributes {stable_mosaic.version = 11 : i64} {
  func.func @_mlp_softmax_kernel(%arg0: i32, %arg1: memref<16x32xf32, #tpu.memory_space<vmem>>, %arg2: memref<32x128xf32, #tpu.memory_space<vmem>>, %arg3: memref<3x128xf32, #tpu.memory_space<vmem>>, %arg4: memref<128x128xf32, #tpu.memory_space<vmem>>, %arg5: memref<128x128xf32, #tpu.memory_space<vmem>>, %arg6: memref<16x128xf32, #tpu.memory_space<vmem>>) attributes {dimension_semantics = [#tpu.dimension_semantics<parallel>], iteration_bounds = array<i64: 1>, scalar_prefetch = 0 : i64, scratch_operands = 0 : i64, tpu.core_type = #tpu.core_type<tc>, window_params = [{transform_indices = @transform_0, window_bounds = array<i64: 16, 32>}, {pipeline_mode = #tpu.pipeline_mode<synchronous>, transform_indices = @transform_1, window_bounds = array<i64: 32, 128>}, {pipeline_mode = #tpu.pipeline_mode<synchronous>, transform_indices = @transform_2, window_bounds = array<i64: 3, 128>}, {pipeline_mode = #tpu.pipeline_mode<synchronous>, transform_indices = @transform_3, window_bounds = array<i64: 128, 128>}, {pipeline_mode = #tpu.pipeline_mode<synchronous>, transform_indices = @transform_4, window_bounds = array<i64: 128, 128>}, {transform_indices = @transform_5, window_bounds = array<i64: 16, 128>}]} {
    %c0 = arith.constant 0 : index
    %c0_0 = arith.constant 0 : index
    %0 = vector.load %arg1[%c0, %c0_0] : memref<16x32xf32, #tpu.memory_space<vmem>>, vector<16x32xf32>
    %c0_1 = arith.constant 0 : index
    %c0_2 = arith.constant 0 : index
    %1 = vector.load %arg3[%c0_1, %c0_2] : memref<3x128xf32, #tpu.memory_space<vmem>>, vector<1x128xf32>
    %c1 = arith.constant 1 : index
    %c0_3 = arith.constant 0 : index
    %2 = vector.load %arg3[%c1, %c0_3] : memref<3x128xf32, #tpu.memory_space<vmem>>, vector<1x128xf32>
    %c2 = arith.constant 2 : index
    %c0_4 = arith.constant 0 : index
    %3 = vector.load %arg3[%c2, %c0_4] : memref<3x128xf32, #tpu.memory_space<vmem>>, vector<1x128xf32>
    %c0_5 = arith.constant 0 : index
    %c0_6 = arith.constant 0 : index
    %4 = vector.load %arg2[%c0_5, %c0_6] : memref<32x128xf32, #tpu.memory_space<vmem>>, vector<32x128xf32>
    %cst = arith.constant dense<0.000000e+00> : vector<16x128xf32>
    %5 = tpu.matmul %0, %4, %cst {dimension_numbers = #tpu.dot_dimension_numbers<[1], [0], [0], [1], [0, 0, 1, 1], [], []>} : vector<16x32xf32>, vector<32x128xf32>, vector<16x128xf32> -> vector<16x128xf32>
    %6 = vector.broadcast %1 : vector<1x128xf32> to vector<16x128xf32>
    %7 = arith.addf %5, %6 : vector<16x128xf32>
    %cst_7 = arith.constant 0.000000e+00 : f32
    %8 = vector.broadcast %cst_7 : f32 to vector<16x128xf32>
    %9 = arith.maximumf %7, %8 : vector<16x128xf32>
    %c0_8 = arith.constant 0 : index
    %c0_9 = arith.constant 0 : index
    %10 = vector.load %arg4[%c0_8, %c0_9] : memref<128x128xf32, #tpu.memory_space<vmem>>, vector<128x128xf32>
    %cst_10 = arith.constant dense<0.000000e+00> : vector<16x128xf32>
    %11 = tpu.matmul %9, %10, %cst_10 {dimension_numbers = #tpu.dot_dimension_numbers<[1], [0], [0], [1], [0, 0, 1, 1], [], []>} : vector<16x128xf32>, vector<128x128xf32>, vector<16x128xf32> -> vector<16x128xf32>
    %12 = vector.broadcast %2 : vector<1x128xf32> to vector<16x128xf32>
    %13 = arith.addf %11, %12 : vector<16x128xf32>
    %cst_11 = arith.constant 0.000000e+00 : f32
    %14 = vector.broadcast %cst_11 : f32 to vector<16x128xf32>
    %15 = arith.maximumf %13, %14 : vector<16x128xf32>
    %c0_12 = arith.constant 0 : index
    %c0_13 = arith.constant 0 : index
    %16 = vector.load %arg5[%c0_12, %c0_13] : memref<128x128xf32, #tpu.memory_space<vmem>>, vector<128x128xf32>
    %cst_14 = arith.constant dense<0.000000e+00> : vector<16x128xf32>
    %17 = tpu.matmul %15, %16, %cst_14 {dimension_numbers = #tpu.dot_dimension_numbers<[1], [0], [0], [1], [0, 0, 1, 1], [], []>} : vector<16x128xf32>, vector<128x128xf32>, vector<16x128xf32> -> vector<16x128xf32>
    %18 = vector.broadcast %3 : vector<1x128xf32> to vector<16x128xf32>
    %19 = arith.addf %17, %18 : vector<16x128xf32>
    %cst_15 = arith.constant 0.000000e+00 : f32
    %20 = vector.broadcast %cst_15 : f32 to vector<16x128xf32>
    %21 = arith.maximumf %19, %20 : vector<16x128xf32>
    %c0_16 = arith.constant 0 : index
    %c0_17 = arith.constant 0 : index
    %22 = vector.load %arg5[%c0_16, %c0_17] : memref<128x128xf32, #tpu.memory_space<vmem>>, vector<128x128xf32>
    %cst_18 = arith.constant dense<0.000000e+00> : vector<16x128xf32>
    %23 = tpu.matmul %21, %22, %cst_18 {dimension_numbers = #tpu.dot_dimension_numbers<[1], [0], [0], [1], [0, 0, 1, 1], [], []>} : vector<16x128xf32>, vector<128x128xf32>, vector<16x128xf32> -> vector<16x128xf32>
    %24 = vector.broadcast %3 : vector<1x128xf32> to vector<16x128xf32>
    %25 = arith.addf %23, %24 : vector<16x128xf32>
    %cst_19 = arith.constant dense<0xFF800000> : vector<16xf32>
    %26 = vector.multi_reduction <maximumf>, %25, %cst_19 [1] : vector<16x128xf32> to vector<16xf32>
    %27 = vector.shape_cast %26 : vector<16xf32> to vector<16x1xf32>
    %28 = vector.broadcast %27 : vector<16x1xf32> to vector<16x128xf32>
    %29 = arith.subf %25, %28 : vector<16x128xf32>
    %30 = math.exp %29 : vector<16x128xf32>
    %cst_20 = arith.constant dense<0.000000e+00> : vector<16xf32>
    %31 = vector.multi_reduction <add>, %30, %cst_20 [1] : vector<16x128xf32> to vector<16xf32>
    %32 = vector.shape_cast %31 : vector<16xf32> to vector<16x1xf32>
    %33 = tpu.reciprocal %32 {approx = true} : vector<16x1xf32> -> vector<16x1xf32>
    %34 = vector.broadcast %33 : vector<16x1xf32> to vector<16x128xf32>
    %35 = arith.mulf %30, %34 : vector<16x128xf32>
    %c0_21 = arith.constant 0 : index
    %c0_22 = arith.constant 0 : index
    %36 = vector.load %arg6[%c0_21, %c0_22] : memref<16x128xf32, #tpu.memory_space<vmem>>, vector<16x128xf32>
    tpu.vector_store %arg6[%c0_21, %c0_22], %35 {strides = array<i32>} : memref<16x128xf32, #tpu.memory_space<vmem>>, vector<16x128xf32>,
    return
  }
  func.func @transform_0(%arg0: i32) -> (i32, i32) {
    %c0_i32 = arith.constant 0 : i32
    %c0_i32_0 = arith.constant 0 : i32
    return %arg0, %c0_i32 : i32, i32
  }
  func.func @transform_1(%arg0: i32) -> (i32, i32) {
    %c0_i32 = arith.constant 0 : i32
    %c0_i32_0 = arith.constant 0 : i32
    %c0_i32_1 = arith.constant 0 : i32
    return %c0_i32, %c0_i32_0 : i32, i32
  }
  func.func @transform_2(%arg0: i32) -> (i32, i32) {
    %c0_i32 = arith.constant 0 : i32
    %c0_i32_0 = arith.constant 0 : i32
    %c0_i32_1 = arith.constant 0 : i32
    return %c0_i32, %c0_i32_0 : i32, i32
  }
  func.func @transform_3(%arg0: i32) -> (i32, i32) {
    %c0_i32 = arith.constant 0 : i32
    %c0_i32_0 = arith.constant 0 : i32
    %c0_i32_1 = arith.constant 0 : i32
    return %c0_i32, %c0_i32_0 : i32, i32
  }
  func.func @transform_4(%arg0: i32) -> (i32, i32) {
    %c0_i32 = arith.constant 0 : i32
    %c0_i32_0 = arith.constant 0 : i32
    %c0_i32_1 = arith.constant 0 : i32
    return %c0_i32, %c0_i32_0 : i32, i32
  }
  func.func @transform_5(%arg0: i32) -> (i32, i32) {
    %c0_i32 = arith.constant 0 : i32
    %c0_i32_0 = arith.constant 0 : i32
    return %arg0, %c0_i32 : i32, i32
  }
}

</mosaic_0001>

<bundles_post_ra>
// kernel: graph_keyword_tree_node_forward.1
= control target key start
LH: loop header
LB: loop body
LE: loop exit
PB: predicated region body
PF: predicated region fallthrough
CT: control target
= control target key end

     0   :  { %vm34_vm0 = vcmask 261120   ;;  %s798_s0 = inlined_call_operand.vmem [shape: f32[16,32], index: 0, kind: input, shape index: {}]   ;;  %s799_s1 = inlined_call_operand.vmem [shape: f32[32,128], index: 1, kind: input, shape index: {}]   ;;  %s800_s2 = inlined_call_operand.vmem [shape: f32[3,128], index: 2, kind: input, shape index: {}]   ;;  %s801_s3 = inlined_call_operand.vmem [shape: f32[128,128], index: 3, kind: input, shape index: {}]   ;;  %s802_s4 = inlined_call_operand.vmem [shape: f32[128,128], index: 4, kind: input, shape index: {}]   ;;  %s803_s5 = inlined_call_operand.hbm [shape: f32[16,128], index: 5, kind: output, shape index: {}]  }
   0x1   :  { %v29_v0 = vld [vmem:[%s799_s1 + $0x18] sm:$0xff]  ;;  %v28_v1 = vld [vmem:[%s799_s1 + $0x10] sm:$0xff]  ;;  %v21_v2 = vld [vmem:[%s798_s0] sm:$0xff] }
   0x2   :  { %488 = vmatprep.subr.mxu0 %v29_v0  ;;  %v27_v3 = vld [vmem:[%s799_s1 + $0x8] sm:$0xff]  ;;  %496 = vmatprep.mubr.msk.f32.mxu0 %vm34_vm0, %v21_v2  ;;  %v133_v4 = vld [vmem:[%s801_s3 + $0x78] sm:$0xff]  ;;  %v132_v5 = vld [vmem:[%s801_s3 + $0x70] sm:$0xff] }
   0x3   :  { %489 = vmatpush3.msra.mxu0 %v29_v0  ;;  %499 = vmatprep.subr.mxu1 %v133_v4  ;;  %v26_v6 = vld [vmem:[%s799_s1] sm:$0xff]  ;;  %v131_v7 = vld [vmem:[%s801_s3 + $0x68] sm:$0xff] }
   0x4   :  { %490 = vmatprep.subr.mxu0 %v28_v1  ;;  %500 = vmatpush3.msra.mxu1 %v133_v4  ;;  %v22_v8 = vld [vmem:[%s798_s0 + $0x8] sm:$0xff]  ;;  %v130_v9 = vld [vmem:[%s801_s3 + $0x60] sm:$0xff] }
   0x5   :  { %491 = vmatpush3.msra.mxu0 %v28_v1  ;;  %501 = vmatprep.subr.mxu1 %v132_v5 }
   0x6   :  { %492 = vmatprep.subr.mxu0 %v27_v3  ;;  %502 = vmatpush3.msra.mxu1 %v132_v5 }
   0x7   :  { %493 = vmatpush3.msra.mxu0 %v27_v3 }
   0x8   :  { %10 = vsyncpa [#allocation3], 0  ;;  %494 = vmatprep.subr.mxu0 %v26_v6  ;;  %503 = vmatprep.subr.mxu1 %v131_v7  ;;  %v129_v10 = vld [vmem:[%s801_s3 + $0x58] sm:$0xff]  ;;  %v128_v11 = vld [vmem:[%s801_s3 + $0x50] sm:$0xff] }
   0x9   :  { %495 = vmatpush3.msra.mxu0 %v26_v6  ;;  %504 = vmatpush3.msra.mxu1 %v131_v7  ;;  %v127_v12 = vld [vmem:[%s801_s3 + $0x48] sm:$0xff]  ;;  %v126_v13 = vld [vmem:[%s801_s3 + $0x40] sm:$0xff]  ;;  %v125_v14 = vld [vmem:[%s801_s3 + $0x38] sm:$0xff] }
   0xa   :  { %497 = vmatmul.mubr.msk.f32.vlgmr.msra.gmra.mxu0 %vm34_vm0, %v22_v8  ;;  %505 = vmatprep.subr.mxu1 %v130_v9  ;;  %v124_v15 = vld [vmem:[%s801_s3 + $0x30] sm:$0xff]  ;;  %v123_v16 = vld [vmem:[%s801_s3 + $0x28] sm:$0xff]  ;;  %v122_v17 = vld [vmem:[%s801_s3 + $0x20] sm:$0xff] }
   0xb   :  { %506 = vmatpush3.msra.mxu1 %v130_v9  ;;  %v121_v18 = vld [vmem:[%s801_s3 + $0x18] sm:$0xff]  ;;  %v120_v19 = vld [vmem:[%s801_s3 + $0x10] sm:$0xff]  ;;  %v119_v20 = vld [vmem:[%s801_s3 + $0x8] sm:$0xff] }
   0xc   :  { %507 = vmatprep.subr.mxu1 %v129_v10  ;;  %v118_v21 = vld [vmem:[%s801_s3] sm:$0xff]  ;;  %v230_v22 = vld [vmem:[%s802_s4 + $0x78] sm:$0xff]  ;;  %v229_v23 = vld [vmem:[%s802_s4 + $0x70] sm:$0xff] }
   0xd   :  { %508 = vmatpush3.msra.mxu1 %v129_v10  ;;  %534 = vmatprep.subr.mxu0 %v230_v22  ;;  %v228_v24 = vld [vmem:[%s802_s4 + $0x68] sm:$0xff]  ;;  %v227_v25 = vld [vmem:[%s802_s4 + $0x60] sm:$0xff]  ;;  %v226_v26 = vld [vmem:[%s802_s4 + $0x58] sm:$0xff] }
   0xe   :  { %509 = vmatprep.subr.mxu1 %v128_v11  ;;  %535 = vmatpush3.msra.mxu0 %v230_v22  ;;  %v225_v27 = vld [vmem:[%s802_s4 + $0x50] sm:$0xff]  ;;  %v224_v28 = vld [vmem:[%s802_s4 + $0x48] sm:$0xff]  ;;  %v223_v29 = vld [vmem:[%s802_s4 + $0x40] sm:$0xff] }
   0xf   :  { %510 = vmatpush3.msra.mxu1 %v128_v11  ;;  %536 = vmatprep.subr.mxu0 %v229_v23  ;;  %v222_v30 = vld [vmem:[%s802_s4 + $0x38] sm:$0xff]  ;;  %v221_v31 = vld [vmem:[%s802_s4 + $0x30] sm:$0xff]  ;;  %v220_v32 = vld [vmem:[%s802_s4 + $0x28] sm:$0xff] }
  0x10   :  { %511 = vmatprep.subr.mxu1 %v127_v12  ;;  %537 = vmatpush3.msra.mxu0 %v229_v23  ;;  %v219_v33 = vld [vmem:[%s802_s4 + $0x20] sm:$0xff]  ;;  %v218_v41 = vld [vmem:[%s802_s4 + $0x18] sm:$0xff]  ;;  %v217_v42 = vld [vmem:[%s802_s4 + $0x10] sm:$0xff] }
  0x11   :  { %512 = vmatpush3.msra.mxu1 %v127_v12  ;;  %538 = vmatprep.subr.mxu0 %v228_v24  ;;  %v423_v34 = vld [vmem:[%s800_s2] ss:$0 sm:$0xff]  ;;  %v216_v43 = vld [vmem:[%s802_s4 + $0x8] sm:$0xff]  ;;  %v426_v45 = vld [vmem:[%s800_s2 + $0x1] ss:$0 sm:$0xff] }
  0x12   :  { %513 = vmatprep.subr.mxu1 %v126_v13  ;;  %539 = vmatpush3.msra.mxu0 %v228_v24  ;;  %v215_v44 = vld [vmem:[%s802_s4] sm:$0xff] }
  0x13   :  { %514 = vmatpush3.msra.mxu1 %v126_v13  ;;  %540 = vmatprep.subr.mxu0 %v227_v25  ;;  %v427_v52 = vld [vmem:[%s800_s2 + $0x2] ss:$0 sm:$0xff]  ;;  %s637_s2 = smov [#allocation2]  }
  0x14   :  { %515 = vmatprep.subr.mxu1 %v125_v14  ;;  %541 = vmatpush3.msra.mxu0 %v227_v25  ;;  %s412_s4 = sshll.u32 %s637_s2, 4  ;;  %s413_s4 = int_to_ptr.vmem [resolvable:$true] %s412_s4 }
  0x15   :  { %516 = vmatpush3.msra.mxu1 %v125_v14  ;;  %542 = vmatprep.subr.mxu0 %v226_v26  ;;  %s615_s17 = scalar_lea.vmem %s413_s4, 256  ;;  %p620_p1 = scmp.lt.s32.totalorder %s413_s4, %s413_s4 }
  0x16   :  { %517 = vmatprep.subr.mxu1 %v124_v15  ;;  %543 = vmatpush3.msra.mxu0 %v226_v26  ;;  %p616_p0 = scmp.ne.s32.totalorder %s413_s4, %s615_s17  ;;  %p621_p2 = scmp.lt.s32.totalorder %s615_s17, %s615_s17 }
  0x17   :  { %518 = vmatpush3.msra.mxu1 %v124_v15  ;;  %544 = vmatprep.subr.mxu0 %v225_v27 }
  0x18   :  { %519 = vmatprep.subr.mxu1 %v123_v16  ;;  %545 = vmatpush3.msra.mxu0 %v225_v27  ;;  %p622_p3 = por %p621_p2, %p620_p1 }
  0x19   :  { %520 = vmatpush3.msra.mxu1 %v123_v16  ;;  %546 = vmatprep.subr.mxu0 %v224_v28 }
  0x1a   :  { %521 = vmatprep.subr.mxu1 %v122_v17  ;;  %547 = vmatpush3.msra.mxu0 %v224_v28  ;;  %p623_p4 = pnand %p622_p3, %p616_p0 }
  0x1b   :  { %522 = vmatpush3.msra.mxu1 %v122_v17  ;;  %548 = vmatprep.subr.mxu0 %v223_v29 }
  0x1c   :  { %523 = vmatprep.subr.mxu1 %v121_v18  ;;  %549 = vmatpush3.msra.mxu0 %v223_v29 }
  0x1d   :  { %524 = vmatpush3.msra.mxu1 %v121_v18  ;;  %550 = vmatprep.subr.mxu0 %v222_v30 }
  0x1e   :  { %525 = vmatprep.subr.mxu1 %v120_v19  ;;  %551 = vmatpush3.msra.mxu0 %v222_v30 }
  0x1f   :  { %526 = vmatpush3.msra.mxu1 %v120_v19  ;;  %552 = vmatprep.subr.mxu0 %v221_v31 }
  0x20   :  { %527 = vmatprep.subr.mxu1 %v119_v20  ;;  %553 = vmatpush3.msra.mxu0 %v221_v31 }
  0x21   :  { %528 = vmatpush3.msra.mxu1 %v119_v20  ;;  %554 = vmatprep.subr.mxu0 %v220_v32 }
  0x22   :  { %529 = vmatprep.subr.mxu1 %v118_v21  ;;  %555 = vmatpush3.msra.mxu0 %v220_v32 }
  0x23   :  { %530 = vmatpush3.msra.mxu1 %v118_v21  ;;  %556 = vmatprep.subr.mxu0 %v219_v33 }
  0x24   :  { %569 = vmatprep.subr.mxu1 %v230_v22  ;;  %557 = vmatpush3.msra.mxu0 %v219_v33 }
  0x25   :  { %558 = vmatprep.subr.mxu0 %v218_v41 }
  0x26   :  { %559 = vmatpush3.msra.mxu0 %v218_v41 }
  0x27   :  { %560 = vmatprep.subr.mxu0 %v217_v42 }
  0x28   :  { %561 = vmatpush3.msra.mxu0 %v217_v42 }
  0x29   :  { %562 = vmatprep.subr.mxu0 %v216_v43 }
  0x2a   :  { %563 = vmatpush3.msra.mxu0 %v216_v43 }
  0x2b   :  { %564 = vmatprep.subr.mxu0 %v215_v44 }
  0x2c   :  { %565 = vmatpush3.msra.mxu0 %v215_v44 }
  0xca   :  { %v498_v35 = vpop.f32.mrf.mxu0 }
  0xcb   :  { %v113_v36 = vadd.f32 %v498_v35, %v423_v34 }
  0xcc   :  { %v107_v37 = vpop.f32.mrf.mxu0 }
  0xcd   :  { %v108_v38 = vadd.f32 %v423_v34, %v107_v37  ;;  %v117_v40 = vmax.f32 %v113_v36, 0.0 }
  0xcf   :  { %v116_v39 = vmax.f32 %v108_v38, 0.0 }
  0xd1   :  { %531 = vmatprep.mubr.f32.mxu1 %v116_v39 }
  0xd2   :  { %532 = vmatmul.mubr.f32.vlgmr.msra.gmra.mxu1 %v117_v40 }
  0xd3   :  { %570 = vmatpush3.msra.mxu1 %v230_v22 }
  0xd4   :  { %571 = vmatprep.subr.mxu1 %v229_v23 }
  0xd5   :  { %572 = vmatpush3.msra.mxu1 %v229_v23 }
  0xd6   :  { %573 = vmatprep.subr.mxu1 %v228_v24 }
  0xd7   :  { %574 = vmatpush3.msra.mxu1 %v228_v24 }
  0xd8   :  { %575 = vmatprep.subr.mxu1 %v227_v25 }
  0xd9   :  { %576 = vmatpush3.msra.mxu1 %v227_v25 }
  0xda   :  { %577 = vmatprep.subr.mxu1 %v226_v26 }
  0xdb   :  { %578 = vmatpush3.msra.mxu1 %v226_v26 }
  0xdc   :  { %579 = vmatprep.subr.mxu1 %v225_v27 }
  0xdd   :  { %580 = vmatpush3.msra.mxu1 %v225_v27 }
  0xde   :  { %581 = vmatprep.subr.mxu1 %v224_v28 }
  0xdf   :  { %582 = vmatpush3.msra.mxu1 %v224_v28 }
  0xe0   :  { %583 = vmatprep.subr.mxu1 %v223_v29 }
  0xe1   :  { %584 = vmatpush3.msra.mxu1 %v223_v29 }
  0xe2   :  { %585 = vmatprep.subr.mxu1 %v222_v30 }
  0xe3   :  { %586 = vmatpush3.msra.mxu1 %v222_v30 }
  0xe4   :  { %587 = vmatprep.subr.mxu1 %v221_v31 }
  0xe5   :  { %588 = vmatpush3.msra.mxu1 %v221_v31 }
  0xe6   :  { %589 = vmatprep.subr.mxu1 %v220_v32 }
  0xe7   :  { %590 = vmatpush3.msra.mxu1 %v220_v32 }
  0xe8   :  { %591 = vmatprep.subr.mxu1 %v219_v33 }
  0xe9   :  { %592 = vmatpush3.msra.mxu1 %v219_v33 }
  0xea   :  { %593 = vmatprep.subr.mxu1 %v218_v41 }
  0xeb   :  { %594 = vmatpush3.msra.mxu1 %v218_v41 }
  0xec   :  { %595 = vmatprep.subr.mxu1 %v217_v42 }
  0xed   :  { %596 = vmatpush3.msra.mxu1 %v217_v42 }
  0xee   :  { %597 = vmatprep.subr.mxu1 %v216_v43 }
  0xef   :  { %598 = vmatpush3.msra.mxu1 %v216_v43 }
  0xf0   :  { %599 = vmatprep.subr.mxu1 %v215_v44 }
  0xf1   :  { %600 = vmatpush3.msra.mxu1 %v215_v44 }
 0x192   :  { %v533_v46 = vpop.f32.mrf.mxu1 }
 0x193   :  { %v210_v47 = vadd.f32 %v533_v46, %v426_v45 }
 0x194   :  { %v204_v48 = vpop.f32.mrf.mxu1 }
 0x195   :  { %v205_v49 = vadd.f32 %v426_v45, %v204_v48  ;;  %v214_v51 = vmax.f32 %v210_v47, 0.0 }
 0x197   :  { %v213_v50 = vmax.f32 %v205_v49, 0.0 }
 0x199   :  { %566 = vmatprep.mubr.f32.mxu0 %v213_v50 }
 0x19a   :  { %567 = vmatmul.mubr.f32.vlgmr.msra.gmra.mxu0 %v214_v51 }
 0x25a   :  { %v568_v53 = vpop.f32.mrf.mxu0 }
 0x25b   :  { %v307_v54 = vadd.f32 %v568_v53, %v427_v52 }
 0x25c   :  { %v301_v55 = vpop.f32.mrf.mxu0 }
 0x25d   :  { %v302_v56 = vadd.f32 %v427_v52, %v301_v55  ;;  %v311_v58 = vmax.f32 %v307_v54, 0.0 }
 0x25f   :  { %v310_v57 = vmax.f32 %v302_v56, 0.0 }
 0x261   :  { %601 = vmatprep.mubr.f32.mxu1 %v310_v57 }
 0x262   :  { %602 = vmatmul.mubr.f32.vlgmr.msra.gmra.mxu1 %v311_v58 }
 0x322   :  { %v603_v59 = vpop.f32.mrf.mxu1 }
 0x323   :  { %v384_v62 = vadd.f32 %v603_v59, %v427_v52 }
 0x324   :  { %v378_v60 = vpop.f32.mrf.mxu1 }
 0x325   :  { %v379_v61 = vadd.f32 %v427_v52, %v378_v60 }
 0x327   :  { %387 = vmax.xlane.f32.xlu0 %v379_v61 }
 0x32b   :  { %389 = vmax.xlane.f32.xlu0 %v384_v62 }
 0x3b0   :  { %v388_v63 = vpop.xlane.xlu0 %387 }
 0x3b1   :  { %v391_v0 = vsub.f32 %v379_v61, %v388_v63 }
 0x3b3   :  { %v393_v1 = vmul.f32 1.442695, %v391_v0 }
 0x3b4   :  { %v390_v2 = vpop.xlane.xlu0 %389 }
 0x3b5   :  { %607 = vpow2.f32 %v393_v1  ;;  %v392_v3 = vsub.f32 %v384_v62, %v390_v2 }
 0x3b7   :  { %v395_v4 = vmul.f32 1.442695, %v392_v3 }
 0x3b9   :  { %609 = vpow2.f32 %v395_v4 }
 0x3c2   :  { %v608_v5 = vpop.eup %607 }
 0x3c3   :  { %397 = vadd.xlane.f32.xlu1 %v608_v5 }
 0x3c6   :  { %v610_v6 = vpop.eup %609 }
 0x3c7   :  { %399 = vadd.xlane.f32.xlu1 %v610_v6 }
 0x44c   :  { %v398_v7 = vpop.xlane.xlu1 %397 }
 0x44d   :  { %611 = vrcp.f32 %v398_v7 }
 0x450   :  { %v400_v8 = vpop.xlane.xlu1 %399 }
 0x451   :  { %613 = vrcp.f32 %v400_v8 }
 0x45a   :  { %v612_v9 = vpop.eup %611 }
 0x45b   :  { %v403_v10 = vmul.f32 %v612_v9, %v608_v5 }
 0x45d   :  { %405 = vst [vmem:[#allocation2] sm:$0xff] %v403_v10 }
 0x45e   :  { %v614_v11 = vpop.eup %613 }
 0x45f   :  { %v404_v12 = vmul.f32 %v614_v11, %v610_v6 }
 0x461   :  { %406 = vst [vmem:[#allocation2 + $0x8] sm:$0xff] %v404_v12 }
 0x462   :  { %626 = shalt.err (!%p623_p4)
}
 0x463   :  { %s638_s18 = smov 128   ;;  %s639_s19 = smov 8  }
 0x464   :  { %418 = dma.vmem_to_hbm [thread:$0]  %s413_s4, 256, %s803_s5, [#allocation3], %s638_s18, %s638_s18, %s639_s19  }
 0x465   :  { %635 = dma.done.wait [#allocation3], 256  }
 0x466   :  { %636 = vsyncadd [#allocation3], 4294967040 }
 0x467   :  { %422 = vsyncpa [#allocation3], 1 }

</bundles_post_ra>
